<compile_context>
chip_gen: v7x
topology: tpu7x:2x2x1
jax: 0.10.0
libtpu: 0.0.40
codegen_flags: <defaults>
</compile_context>

<pallas_src>
import jax
import jax.numpy as jnp
from jax.experimental import pallas as pl
from jax.experimental.pallas import tpu as pltpu


def _mul_conv1x1_kernel(x_ref, s_ref, w_ref, o_ref):
    # x_ref: (C_in, HW_block)  f32 NCHW activations flattened over H*W
    # s_ref: (1, C_in)         f32 per-channel SE gate
    # w_ref: (C_out, C_in)     bf16 1x1 conv weight (pre-cast once at init)
    # o_ref: (C_out, HW_block) f32 output
    #
    # Fold the gate into the (smaller) weight; upcast the bf16 weight so the
    # contraction over K=720 uses f32 operands + f32 accumulation -- the MXU
    # is idle at this size, so full precision is free.
    w_scaled = w_ref[...].astype(jnp.float32) * s_ref[...]        # VPU, (C_out, C_in)
    o_ref[...] = jnp.dot(
        w_scaled, x_ref[...], preferred_element_type=jnp.float32
    ).astype(o_ref.dtype)                                          # MXU


def _num_parallel_hw_blocks():
    """2 on v7x (2 TensorCores/chip), else 1 (v5e/v6e have a single TC)."""
    try:
        kind = jax.devices()[0].device_kind.lower()
    except Exception:
        return 1
    return 2 if ("v7" in kind or "7x" in kind) else 1


def mul_conv2d_1x1(x_nchw, scale_nc11, weight_oi11):
    """Computes Conv2d_1x1(x_nchw * scale_nc11) with bias=False, NCHW in/out.

    x_nchw:      (N, C_in, H, W)   -- N must be 1 (matches the module's input)
    scale_nc11:  (N, C_in, 1, 1)
    weight_oi11: (C_out, C_in, 1, 1); ideally already bf16 (pre-cast at init)
    returns:     (N, C_out, H, W)  float32
    """
    N, C_in, H, W = x_nchw.shape
    # TODO(synk): batch > 1 needs per-batch scale handling / a batched grid.
    assert N == 1, "kernel assumes batch size 1 (per-batch scales otherwise dropped)"
    C_out = weight_oi11.shape[0]
    HW = H * W

    # Free contiguous reshapes -- no HBM transpose traffic.
    x_mat = x_nchw.reshape(C_in, HW)            # (720, 196) f32
    s_row = scale_nc11.reshape(1, C_in)         # (1, 720)   f32
    w_mat = weight_oi11.reshape(C_out, C_in)    # (120, 720) bf16 (if pre-cast)

    # v7x: split HW across both TensorCores in 128-lane blocks.
    # v5e/v6e: single grid point, whole problem in one (cheap) step.
    if _num_parallel_hw_blocks() > 1:
        block_hw = 128                          # lane-aligned; tail block is masked
        grid = (pl.cdiv(HW, block_hw),)
    else:
        block_hw = HW                           # full extent -> (8,128) rule satisfied
        grid = (1,)

    bytes_accessed = (
        x_mat.size * x_mat.dtype.itemsize
        + s_row.size * s_row.dtype.itemsize
        + w_mat.size * w_mat.dtype.itemsize
        + C_out * HW * 4
    )
    cost = pl.CostEstimate(
        flops=2 * C_out * C_in * HW,            # ~33.9 MFLOP
        bytes_accessed=bytes_accessed,          # ~0.83 MB with bf16 weight
        transcendentals=0,
    )

    out_mat = pl.pallas_call(
        _mul_conv1x1_kernel,
        out_shape=jax.ShapeDtypeStruct((C_out, HW), jnp.float32),
        grid=grid,
        in_specs=[
            pl.BlockSpec((C_in, block_hw), lambda i: (0, i)),
            pl.BlockSpec((1, C_in), lambda i: (0, 0)),       # resident across grid
            pl.BlockSpec((C_out, C_in), lambda i: (0, 0)),   # resident across grid
        ],
        out_specs=pl.BlockSpec((C_out, block_hw), lambda i: (0, i)),
        compiler_params=pltpu.CompilerParams(
            dimension_semantics=("parallel",),
        ),
        cost_estimate=cost,
    )(x_mat, s_row, w_mat)

    # Free contiguous reshape back to NCHW.
    return out_mat.reshape(N, C_out, H, W)


if __name__ == "__main__":
    key = jax.random.PRNGKey(0)
    k_x, k_s, k_w = jax.random.split(key, 3)

    # Shapes implied by the module's forward.
    N, C_in, H, W = 1, 720, 14, 14
    C_out = 120

    x195 = jax.random.normal(k_x, (N, C_in, H, W), dtype=jnp.float32)
    x200 = jax.random.normal(k_s, (N, C_in, 1, 1), dtype=jnp.float32)
    # Deterministic synthetic conv weight (Conv2d(720, 120, 1, bias=False)).
    w_f32 = jax.random.normal(k_w, (C_out, C_in, 1, 1), dtype=jnp.float32) * 0.02

    # One-time init cast: the static weight lives in HBM as bf16 (halves its read).
    w_bf16 = w_f32.astype(jnp.bfloat16)

    out = mul_conv2d_1x1(x195, x200, w_bf16)
    out = jax.block_until_ready(out)

    # Reference check against plain f32 JAX (same math as the PyTorch module).
    # x and accumulation are full f32; only the weight is stored in bf16, so the
    # tolerance can be much tighter than the previous both-operands-bf16 version.
    ref = jnp.einsum("nchw,oc->nohw", x195 * x200, w_f32.reshape(C_out, C_in))
    assert out.shape == (N, C_out, H, W), out.shape
    assert jnp.allclose(out, ref, atol=1e-2, rtol=1e-2), float(
        jnp.max(jnp.abs(out - ref))
    )

    print("KERNEL_OK")
</pallas_src>

<mosaic_0001>
module attributes {stable_mosaic.version = 11 : i64} {
  func.func @_mul_conv1x1_kernel(%arg0: i32, %arg1: memref<720x196xf32, #tpu.memory_space<vmem>>, %arg2: memref<1x720xf32, #tpu.memory_space<vmem>>, %arg3: memref<120x720xbf16, #tpu.memory_space<vmem>>, %arg4: memref<120x196xf32, #tpu.memory_space<vmem>>) attributes {dimension_semantics = [#tpu.dimension_semantics<parallel>], iteration_bounds = array<i64: 1>, scalar_prefetch = 0 : i64, scratch_operands = 0 : i64, tpu.core_type = #tpu.core_type<tc>, window_params = [{transform_indices = @transform_0, window_bounds = array<i64: 720, 196>}, {pipeline_mode = #tpu.pipeline_mode<synchronous>, transform_indices = @transform_1, window_bounds = array<i64: 1, 720>}, {pipeline_mode = #tpu.pipeline_mode<synchronous>, transform_indices = @transform_2, window_bounds = array<i64: 120, 720>}, {transform_indices = @transform_3, window_bounds = array<i64: 120, 196>}]} {
    %c0 = arith.constant 0 : index
    %c0_0 = arith.constant 0 : index
    %0 = vector.load %arg3[%c0, %c0_0] : memref<120x720xbf16, #tpu.memory_space<vmem>>, vector<120x720xbf16>
    %1 = arith.extf %0 : vector<120x720xbf16> to vector<120x720xf32>
    %c0_1 = arith.constant 0 : index
    %c0_2 = arith.constant 0 : index
    %2 = vector.load %arg2[%c0_1, %c0_2] : memref<1x720xf32, #tpu.memory_space<vmem>>, vector<1x720xf32>
    %3 = vector.broadcast %2 : vector<1x720xf32> to vector<120x720xf32>
    %4 = arith.mulf %1, %3 : vector<120x720xf32>
    %c0_3 = arith.constant 0 : index
    %c0_4 = arith.constant 0 : index
    %5 = vector.load %arg1[%c0_3, %c0_4] : memref<720x196xf32, #tpu.memory_space<vmem>>, vector<720x196xf32>
    %cst = arith.constant dense<0.000000e+00> : vector<120x196xf32>
    %6 = tpu.matmul %4, %5, %cst {dimension_numbers = #tpu.dot_dimension_numbers<[1], [0], [0], [1], [0, 0, 1, 1], [], []>} : vector<120x720xf32>, vector<720x196xf32>, vector<120x196xf32> -> vector<120x196xf32>
    %c0_5 = arith.constant 0 : index
    %c0_6 = arith.constant 0 : index
    %7 = vector.load %arg4[%c0_5, %c0_6] : memref<120x196xf32, #tpu.memory_space<vmem>>, vector<120x196xf32>
    tpu.vector_store %arg4[%c0_5, %c0_6], %6 {strides = array<i32>} : memref<120x196xf32, #tpu.memory_space<vmem>>, vector<120x196xf32>,
    return
  }
  func.func @transform_0(%arg0: i32) -> (i32, i32) {
    %c0_i32 = arith.constant 0 : i32
    %c0_i32_0 = arith.constant 0 : i32
    return %c0_i32, %arg0 : i32, i32
  }
  func.func @transform_1(%arg0: i32) -> (i32, i32) {
    %c0_i32 = arith.constant 0 : i32
    %c0_i32_0 = arith.constant 0 : i32
    %c0_i32_1 = arith.constant 0 : i32
    return %c0_i32, %c0_i32_0 : i32, i32
  }
  func.func @transform_2(%arg0: i32) -> (i32, i32) {
    %c0_i32 = arith.constant 0 : i32
    %c0_i32_0 = arith.constant 0 : i32
    %c0_i32_1 = arith.constant 0 : i32
    return %c0_i32, %c0_i32_0 : i32, i32
  }
  func.func @transform_3(%arg0: i32) -> (i32, i32) {
    %c0_i32 = arith.constant 0 : i32
    %c0_i32_0 = arith.constant 0 : i32
    return %c0_i32, %arg0 : i32, i32
  }
}

</mosaic_0001>

<bundles_post_ra>
// kernel: tpu_custom_call.1
= control target key start
LH: loop header
LB: loop body
LE: loop exit
PB: predicated region body
PF: predicated region fallthrough
CT: control target
= control target key end

     0   :  { %vm451_vm0 = vcmask 654336   ;;  %vm963_vm1 = vcmask 556032   ;;  %s2697_s0 = inlined_call_operand.vmem [shape: f32[720,196], index: 0, kind: input, shape index: {}]   ;;  %s2698_s2 = inlined_call_operand.vmem [shape: bf16[120,720], index: 2, kind: input, shape index: {}]   ;;  %s2699_s1 = inlined_call_operand.vmem [shape: f32[1,720], index: 1, kind: input, shape index: {}]   ;;  %s2700_s3 = inlined_call_operand.vmem [shape: f32[120,196], index: 3, kind: output, shape index: {}]  }
   0x1   :  { %v272_v0 = vld [vmem:[%s2697_s0 + $0x8] sm:$0xff]  ;;  %v274_v1 = vld [vmem:[%s2697_s0 + $0x18] sm:$0xff]  ;;  %v271_v5 = vld [vmem:[%s2697_s0] sm:$0xff] }
   0x2   :  { %v336_v2 = vld [vmem:[%s2697_s0 + $0x208] sm:$0xff]  ;;  %v1012_v3 = vpack.c.bf16 %v274_v1, %v272_v0  ;;  %v338_v4 = vld [vmem:[%s2697_s0 + $0x218] sm:$0xff]  ;;  %v273_v6 = vld [vmem:[%s2697_s0 + $0x10] sm:$0xff] }
   0x3   :  { %v1076_v7 = vpack.c.bf16 %v338_v4, %v336_v2  ;;  %v1014_v8 = vpack.c.bf16 %v273_v6, %v271_v5  ;;  %v335_v9 = vld [vmem:[%s2697_s0 + $0x200] sm:$0xff]  ;;  %v337_v10 = vld [vmem:[%s2697_s0 + $0x210] sm:$0xff]  ;;  %v276_v11 = vld [vmem:[%s2697_s0 + $0x28] sm:$0xff] }
   0x4   :  { %1013 = vmatprep.subr.bf16.mxu1 %v1012_v3  ;;  %v1078_v12 = vpack.c.bf16 %v337_v10, %v335_v9  ;;  %v278_v13 = vld [vmem:[%s2697_s0 + $0x38] sm:$0xff]  ;;  %v340_v14 = vld [vmem:[%s2697_s0 + $0x228] sm:$0xff]  ;;  %v275_v18 = vld [vmem:[%s2697_s0 + $0x20] sm:$0xff] }
   0x5   :  { %v342_v15 = vld [vmem:[%s2697_s0 + $0x238] sm:$0xff]  ;;  %1077 = vmatprep.subr.bf16.mxu0 %v1076_v7  ;;  %1015 = vmatpush1.bf16.msra.mxu1 %v1014_v8  ;;  %v1016_v16 = vpack.c.bf16 %v278_v13, %v276_v11  ;;  %v277_v19 = vld [vmem:[%s2697_s0 + $0x30] sm:$0xff]  ;;  %v339_v20 = vld [vmem:[%s2697_s0 + $0x220] sm:$0xff] }
   0x6   :  { %v1080_v17 = vpack.c.bf16 %v342_v15, %v340_v14  ;;  %1079 = vmatpush1.bf16.msra.mxu0 %v1078_v12  ;;  %v1018_v21 = vpack.c.bf16 %v277_v19, %v275_v18  ;;  %v341_v22 = vld [vmem:[%s2697_s0 + $0x230] sm:$0xff]  ;;  %v280_v23 = vld [vmem:[%s2697_s0 + $0x48] sm:$0xff]  ;;  %v282_v24 = vld [vmem:[%s2697_s0 + $0x58] sm:$0xff] }
   0x7   :  { %1017 = vmatprep.subr.bf16.mxu1 %v1016_v16  ;;  %v1082_v25 = vpack.c.bf16 %v341_v22, %v339_v20  ;;  %v1020_v26 = vpack.c.bf16 %v282_v24, %v280_v23  ;;  %v344_v27 = vld [vmem:[%s2697_s0 + $0x248] sm:$0xff]  ;;  %v346_v28 = vld [vmem:[%s2697_s0 + $0x258] sm:$0xff]  ;;  %v279_v29 = vld [vmem:[%s2697_s0 + $0x40] sm:$0xff] }
   0x8   :  { %1081 = vmatprep.subr.bf16.mxu0 %v1080_v17  ;;  %v1084_v30 = vpack.c.bf16 %v346_v28, %v344_v27  ;;  %v281_v31 = vld [vmem:[%s2697_s0 + $0x50] sm:$0xff]  ;;  %v343_v32 = vld [vmem:[%s2697_s0 + $0x240] sm:$0xff]  ;;  %v284_v35 = vld [vmem:[%s2697_s0 + $0x68] sm:$0xff] }
   0x9   :  { %v345_v33 = vld [vmem:[%s2697_s0 + $0x250] sm:$0xff]  ;;  %1019 = vmatpush1.bf16.msra.mxu1 %v1018_v21  ;;  %v1022_v34 = vpack.c.bf16 %v281_v31, %v279_v29  ;;  %v286_v36 = vld [vmem:[%s2697_s0 + $0x78] sm:$0xff]  ;;  %v348_v37 = vld [vmem:[%s2697_s0 + $0x268] sm:$0xff] }
   0xa   :  { %1083 = vmatpush1.bf16.msra.mxu0 %v1082_v25  ;;  %1021 = vmatprep.subr.bf16.mxu1 %v1020_v26  ;;  %v1086_v38 = vpack.c.bf16 %v345_v33, %v343_v32  ;;  %v1024_v39 = vpack.c.bf16 %v286_v36, %v284_v35  ;;  %v350_v40 = vld [vmem:[%s2697_s0 + $0x278] sm:$0xff]  ;;  %v283_v41 = vld [vmem:[%s2697_s0 + $0x60] sm:$0xff]  ;;  %v285_v42 = vld [vmem:[%s2697_s0 + $0x70] sm:$0xff] }
   0xb   :  { %1085 = vmatprep.subr.bf16.mxu0 %v1084_v30  ;;  %v1088_v43 = vpack.c.bf16 %v350_v40, %v348_v37  ;;  %v347_v44 = vld [vmem:[%s2697_s0 + $0x260] sm:$0xff]  ;;  %v349_v45 = vld [vmem:[%s2697_s0 + $0x270] sm:$0xff]  ;;  %v288_v46 = vld [vmem:[%s2697_s0 + $0x88] sm:$0xff]  ;;  %v1026_v50 = vpack.c.bf16 %v285_v42, %v283_v41 }
   0xc   :  { %v290_v47 = vld [vmem:[%s2697_s0 + $0x98] sm:$0xff]  ;;  %v352_v48 = vld [vmem:[%s2697_s0 + $0x288] sm:$0xff]  ;;  %v1090_v51 = vpack.c.bf16 %v349_v45, %v347_v44  ;;  %v287_v53 = vld [vmem:[%s2697_s0 + $0x80] sm:$0xff] }
   0xd   :  { %v354_v49 = vld [vmem:[%s2697_s0 + $0x298] sm:$0xff]  ;;  %1023 = vmatpush1.bf16.msra.mxu1 %v1022_v34  ;;  %v1028_v52 = vpack.c.bf16 %v290_v47, %v288_v46  ;;  %v289_v54 = vld [vmem:[%s2697_s0 + $0x90] sm:$0xff]  ;;  %v351_v55 = vld [vmem:[%s2697_s0 + $0x280] sm:$0xff]  ;;  %v151_v47 = vlaneseq }
   0xe   :  { %1087 = vmatpush1.bf16.msra.mxu0 %v1086_v38  ;;  %1025 = vmatprep.subr.bf16.mxu1 %v1024_v39  ;;  %v1092_v56 = vpack.c.bf16 %v354_v49, %v352_v48  ;;  %v353_v57 = vld [vmem:[%s2697_s0 + $0x290] sm:$0xff]  ;;  %v292_v58 = vld [vmem:[%s2697_s0 + $0xa8] sm:$0xff]  ;;  %v294_v59 = vld [vmem:[%s2697_s0 + $0xb8] sm:$0xff]  ;;  %v1030_v62 = vpack.c.bf16 %v289_v54, %v287_v53 }
   0xf   :  { %1089 = vmatprep.subr.bf16.mxu0 %v1088_v43  ;;  %v356_v60 = vld [vmem:[%s2697_s0 + $0x2a8] sm:$0xff]  ;;  %v358_v61 = vld [vmem:[%s2697_s0 + $0x2b8] sm:$0xff]  ;;  %v1094_v63 = vpack.c.bf16 %v353_v57, %v351_v55  ;;  %v1032_v0 = vpack.c.bf16 %v294_v59, %v292_v58  ;;  %v291_v1 = vld [vmem:[%s2697_s0 + $0xa0] sm:$0xff] }
  0x10   :  { %v293_v2 = vld [vmem:[%s2697_s0 + $0xb0] sm:$0xff]  ;;  %v355_v3 = vld [vmem:[%s2697_s0 + $0x2a0] sm:$0xff]  ;;  %v1096_v4 = vpack.c.bf16 %v358_v61, %v356_v60  ;;  %v296_v6 = vld [vmem:[%s2697_s0 + $0xc8] sm:$0xff]  ;;  %v1550_v60 = vshrl.u32 %v151_v47, 7 }
  0x11   :  { %1027 = vmatpush1.bf16.msra.mxu1 %v1026_v50  ;;  %v357_v5 = vld [vmem:[%s2697_s0 + $0x2b0] sm:$0xff]  ;;  %v298_v7 = vld [vmem:[%s2697_s0 + $0xd8] sm:$0xff]  ;;  %v360_v8 = vld [vmem:[%s2697_s0 + $0x2c8] sm:$0xff]  ;;  %v1034_v10 = vpack.c.bf16 %v293_v2, %v291_v1 }
  0x12   :  { %1091 = vmatpush1.bf16.msra.mxu0 %v1090_v51  ;;  %1029 = vmatprep.subr.bf16.mxu1 %v1028_v52  ;;  %v362_v9 = vld [vmem:[%s2697_s0 + $0x2d8] sm:$0xff]  ;;  %v1098_v11 = vpack.c.bf16 %v357_v5, %v355_v3  ;;  %v1036_v12 = vpack.c.bf16 %v298_v7, %v296_v6  ;;  %v295_v13 = vld [vmem:[%s2697_s0 + $0xc0] sm:$0xff]  ;;  %v297_v14 = vld [vmem:[%s2697_s0 + $0xd0] sm:$0xff] }
  0x13   :  { %1093 = vmatprep.subr.bf16.mxu0 %v1092_v56  ;;  %v359_v15 = vld [vmem:[%s2697_s0 + $0x2c0] sm:$0xff]  ;;  %v1100_v16 = vpack.c.bf16 %v362_v9, %v360_v8  ;;  %v361_v17 = vld [vmem:[%s2697_s0 + $0x2d0] sm:$0xff]  ;;  %v300_v18 = vld [vmem:[%s2697_s0 + $0xe8] sm:$0xff]  ;;  %v1038_v22 = vpack.c.bf16 %v297_v14, %v295_v13 }
  0x14   :  { %v302_v19 = vld [vmem:[%s2697_s0 + $0xf8] sm:$0xff]  ;;  %v364_v20 = vld [vmem:[%s2697_s0 + $0x2e8] sm:$0xff]  ;;  %v1102_v23 = vpack.c.bf16 %v361_v17, %v359_v15  ;;  %v299_v25 = vld [vmem:[%s2697_s0 + $0xe0] sm:$0xff] }
  0x15   :  { %1031 = vmatpush1.bf16.msra.mxu1 %v1030_v62  ;;  %v366_v21 = vld [vmem:[%s2697_s0 + $0x2f8] sm:$0xff]  ;;  %v1040_v24 = vpack.c.bf16 %v302_v19, %v300_v18  ;;  %v301_v26 = vld [vmem:[%s2697_s0 + $0xf0] sm:$0xff]  ;;  %v363_v27 = vld [vmem:[%s2697_s0 + $0x2e0] sm:$0xff] }
  0x16   :  { %1095 = vmatpush1.bf16.msra.mxu0 %v1094_v63  ;;  %1033 = vmatprep.subr.bf16.mxu1 %v1032_v0  ;;  %v1104_v28 = vpack.c.bf16 %v366_v21, %v364_v20  ;;  %v365_v29 = vld [vmem:[%s2697_s0 + $0x2f0] sm:$0xff]  ;;  %v304_v30 = vld [vmem:[%s2697_s0 + $0x108] sm:$0xff]  ;;  %v306_v31 = vld [vmem:[%s2697_s0 + $0x118] sm:$0xff]  ;;  %v1042_v34 = vpack.c.bf16 %v301_v26, %v299_v25 }
  0x17   :  { %1097 = vmatprep.subr.bf16.mxu0 %v1096_v4  ;;  %v368_v32 = vld [vmem:[%s2697_s0 + $0x308] sm:$0xff]  ;;  %v370_v33 = vld [vmem:[%s2697_s0 + $0x318] sm:$0xff]  ;;  %v1106_v35 = vpack.c.bf16 %v365_v29, %v363_v27  ;;  %v1044_v36 = vpack.c.bf16 %v306_v31, %v304_v30  ;;  %v303_v37 = vld [vmem:[%s2697_s0 + $0x100] sm:$0xff] }
  0x18   :  { %v305_v38 = vld [vmem:[%s2697_s0 + $0x110] sm:$0xff]  ;;  %v367_v39 = vld [vmem:[%s2697_s0 + $0x300] sm:$0xff]  ;;  %v1108_v40 = vpack.c.bf16 %v370_v33, %v368_v32  ;;  %v308_v42 = vld [vmem:[%s2697_s0 + $0x128] sm:$0xff] }
  0x19   :  { %1035 = vmatpush1.bf16.msra.mxu1 %v1034_v10  ;;  %v369_v41 = vld [vmem:[%s2697_s0 + $0x310] sm:$0xff]  ;;  %v310_v43 = vld [vmem:[%s2697_s0 + $0x138] sm:$0xff]  ;;  %v372_v44 = vld [vmem:[%s2697_s0 + $0x328] sm:$0xff]  ;;  %v1046_v46 = vpack.c.bf16 %v305_v38, %v303_v37 }
  0x1a   :  { %1099 = vmatpush1.bf16.msra.mxu0 %v1098_v11  ;;  %1037 = vmatprep.subr.bf16.mxu1 %v1036_v12  ;;  %v374_v45 = vld [vmem:[%s2697_s0 + $0x338] sm:$0xff]  ;;  %v1110_v48 = vpack.c.bf16 %v369_v41, %v367_v39  ;;  %v1048_v49 = vpack.c.bf16 %v310_v43, %v308_v42  ;;  %v307_v50 = vld [vmem:[%s2697_s0 + $0x120] sm:$0xff]  ;;  %v309_v51 = vld [vmem:[%s2697_s0 + $0x130] sm:$0xff]  ;;  %v157_v11 = vsub.s32 1, %v1550_v60  ;;  %v165_v12 = vsub.s32 3, %v1550_v60 }
  0x1b   :  { %1101 = vmatprep.subr.bf16.mxu0 %v1100_v16  ;;  %v371_v52 = vld [vmem:[%s2697_s0 + $0x320] sm:$0xff]  ;;  %v1112_v53 = vpack.c.bf16 %v374_v45, %v372_v44  ;;  %v373_v54 = vld [vmem:[%s2697_s0 + $0x330] sm:$0xff]  ;;  %v312_v55 = vld [vmem:[%s2697_s0 + $0x148] sm:$0xff]  ;;  %v1050_v59 = vpack.c.bf16 %v309_v51, %v307_v50 }
  0x1c   :  { %v314_v56 = vld [vmem:[%s2697_s0 + $0x158] sm:$0xff]  ;;  %v376_v57 = vld [vmem:[%s2697_s0 + $0x348] sm:$0xff]  ;;  %v1114_v61 = vpack.c.bf16 %v373_v54, %v371_v52  ;;  %v311_v63 = vld [vmem:[%s2697_s0 + $0x140] sm:$0xff] }
  0x1d   :  { %1039 = vmatpush1.bf16.msra.mxu1 %v1038_v22  ;;  %v378_v58 = vld [vmem:[%s2697_s0 + $0x358] sm:$0xff]  ;;  %v1052_v62 = vpack.c.bf16 %v314_v56, %v312_v55  ;;  %v313_v0 = vld [vmem:[%s2697_s0 + $0x150] sm:$0xff]  ;;  %v375_v1 = vld [vmem:[%s2697_s0 + $0x340] sm:$0xff] }
  0x1e   :  { %1103 = vmatpush1.bf16.msra.mxu0 %v1102_v23  ;;  %1041 = vmatprep.subr.bf16.mxu1 %v1040_v24  ;;  %v1116_v2 = vpack.c.bf16 %v378_v58, %v376_v57  ;;  %v377_v3 = vld [vmem:[%s2697_s0 + $0x350] sm:$0xff]  ;;  %v316_v4 = vld [vmem:[%s2697_s0 + $0x168] sm:$0xff]  ;;  %v318_v5 = vld [vmem:[%s2697_s0 + $0x178] sm:$0xff]  ;;  %v1054_v8 = vpack.c.bf16 %v313_v0, %v311_v63  ;;  %v153_v0 = vsub.s32 0, %v1550_v60 }
  0x1f   :  { %1105 = vmatprep.subr.bf16.mxu0 %v1104_v28  ;;  %v380_v6 = vld [vmem:[%s2697_s0 + $0x368] sm:$0xff]  ;;  %v382_v7 = vld [vmem:[%s2697_s0 + $0x378] sm:$0xff]  ;;  %v315_v9 = vld [vmem:[%s2697_s0 + $0x160] sm:$0xff]  ;;  %v1118_v13 = vpack.c.bf16 %v377_v3, %v375_v1  ;;  %v1056_v14 = vpack.c.bf16 %v318_v5, %v316_v4  ;;  %v161_v1 = vsub.s32 2, %v1550_v60 }
  0x20   :  { %v317_v10 = vld [vmem:[%s2697_s0 + $0x170] sm:$0xff]  ;;  %v379_v15 = vld [vmem:[%s2697_s0 + $0x360] sm:$0xff]  ;;  %v320_v17 = vld [vmem:[%s2697_s0 + $0x188] sm:$0xff]  ;;  %v1120_v18 = vpack.c.bf16 %v382_v7, %v380_v6 }
  0x21   :  { %1043 = vmatpush1.bf16.msra.mxu1 %v1042_v34  ;;  %v381_v16 = vld [vmem:[%s2697_s0 + $0x370] sm:$0xff]  ;;  %v322_v19 = vld [vmem:[%s2697_s0 + $0x198] sm:$0xff]  ;;  %v384_v20 = vld [vmem:[%s2697_s0 + $0x388] sm:$0xff]  ;;  %v1058_v26 = vpack.c.bf16 %v317_v10, %v315_v9 }
  0x22   :  { %1107 = vmatpush1.bf16.msra.mxu0 %v1106_v35  ;;  %1045 = vmatprep.subr.bf16.mxu1 %v1044_v36  ;;  %v1602_v21 = vld [vmem:[%s2698_s2] sm:$0xff]  ;;  %v386_v22 = vld [vmem:[%s2697_s0 + $0x398] sm:$0xff]  ;;  %v1616_v25 = vld [vmem:[%s2698_s2 + $0x8] sm:$0xff]  ;;  %v1122_v32 = vpack.c.bf16 %v381_v16, %v379_v15  ;;  %v1060_v33 = vpack.c.bf16 %v322_v19, %v320_v17 }
  0x23   :  { %1109 = vmatprep.subr.bf16.mxu0 %v1108_v40  ;;  %v60_v23 = vunpack.c.h.bf16 %v1602_v21  ;;  %v1611_v24 = vld [vmem:[%s2699_s1] sm:$0x3f]  ;;  %v321_v28 = vld [vmem:[%s2697_s0 + $0x190] sm:$0xff]  ;;  %v62_v30 = vunpack.c.h.bf16 %v1616_v25  ;;  %v324_v36 = vld [vmem:[%s2697_s0 + $0x1a8] sm:$0xff]  ;;  %v1124_v37 = vpack.c.bf16 %v386_v22, %v384_v20 }
  0x24   :  { %v319_v27 = vld [vmem:[%s2697_s0 + $0x180] sm:$0xff]  ;;  %v1625_v29 = vrot.slane %v1611_v24, %v157_v11  ;;  %v1629_v31 = vrot.slane %v1611_v24, %v165_v12  ;;  %v385_v35 = vld [vmem:[%s2697_s0 + $0x390] sm:$0xff]  ;;  %v326_v38 = vld [vmem:[%s2697_s0 + $0x1b8] sm:$0xff]  ;;  %v1777_v19 = vrot.slane %v1611_v24, %v153_v0  ;;  %v1780_v20 = vrot.slane %v1611_v24, %v161_v1 }
  0x25   :  { %1047 = vmatpush1.bf16.msra.mxu1 %v1046_v46  ;;  %v383_v34 = vld [vmem:[%s2697_s0 + $0x380] sm:$0xff]  ;;  %v388_v39 = vld [vmem:[%s2697_s0 + $0x3a8] sm:$0xff]  ;;  %v390_v40 = vld [vmem:[%s2697_s0 + $0x3b8] sm:$0xff]  ;;  %v1064_v54 = vpack.c.bf16 %v326_v38, %v324_v36 }
  0x26   :  { %1111 = vmatpush1.bf16.msra.mxu0 %v1110_v48  ;;  %1049 = vmatprep.subr.bf16.mxu1 %v1048_v49  ;;  %v182_v41 = vmul.f32 %v1625_v29, %v60_v23  ;;  %v184_v42 = vmul.f32 %v1629_v31, %v62_v30  ;;  %v323_v43 = vld [vmem:[%s2697_s0 + $0x1a0] sm:$0xff]  ;;  %v325_v44 = vld [vmem:[%s2697_s0 + $0x1b0] sm:$0xff]  ;;  %v1670_v47 = vld [vmem:[%s2697_s0 + $0x1c8] sm:$0xff]  ;;  %v1062_v49 = vpack.c.bf16 %v321_v28, %v319_v27 }
  0x27   :  { %1113 = vmatprep.subr.bf16.mxu0 %v1112_v53  ;;  %v1660_v45 = vld [vmem:[%s2697_s0 + $0x3a0] sm:$0xff]  ;;  %v1665_v46 = vld [vmem:[%s2697_s0 + $0x3b0] sm:$0xff]  ;;  %v1675_v48 = vld [vmem:[%s2697_s0 + $0x1d8] sm:$0xff]  ;;  %v1126_v53 = vpack.c.bf16 %v385_v35, %v383_v34  ;;  %v1128_v58 = vpack.c.bf16 %v390_v40, %v388_v39  ;;  %v1066_v5 = vpack.c.bf16 %v325_v44, %v323_v43 }
  0x28   :  { %v1680_v50 = vld [vmem:[%s2697_s0 + $0x3c8] sm:$0xff]  ;;  %v1685_v51 = vld [vmem:[%s2697_s0 + $0x3d8] sm:$0xff]  ;;  %v1690_v52 = vld [vmem:[%s2697_s0 + $0x1c0] sm:$0xff]  ;;  %561 = vmatprep.mubr.f32.mxu1 %v182_v41  ;;  %716 = vmatprep.mubr.f32.mxu0 %v184_v42  ;;  %v1130_v6 = vpack.c.bf16 %v1665_v46, %v1660_v45  ;;  %v1068_v7 = vpack.c.bf16 %v1675_v48, %v1670_v47 }
  0x29   :  { %1051 = vmatpush1.bf16.msra.mxu1 %v1050_v59  ;;  %v1695_v55 = vld [vmem:[%s2697_s0 + $0x1d0] sm:$0xff]  ;;  %v1700_v56 = vld [vmem:[%s2697_s0 + $0x3c0] sm:$0xff]  ;;  %v1710_v59 = vld [vmem:[%s2697_s0 + $0x1e8] sm:$0xff]  ;;  %v1132_v11 = vpack.c.bf16 %v1685_v51, %v1680_v50 }
  0x2a   :  { %1115 = vmatpush1.bf16.msra.mxu0 %v1114_v61  ;;  %1053 = vmatprep.subr.bf16.mxu1 %v1052_v62  ;;  %v1705_v57 = vld [vmem:[%s2697_s0 + $0x3d0] sm:$0xff]  ;;  %v1715_v61 = vld [vmem:[%s2697_s0 + $0x1f8] sm:$0xff]  ;;  %v1720_v62 = vld [vmem:[%s2697_s0 + $0x3e8] sm:$0xff]  ;;  %v1070_v12 = vpack.c.bf16 %v1695_v55, %v1690_v52 }
  0x2b   :  { %1117 = vmatprep.subr.bf16.mxu0 %v1116_v2  ;;  %v1725_v63 = vld [vmem:[%s2697_s0 + $0x3f8] sm:$0xff]  ;;  %v1732_v2 = vld [vmem:[%s2697_s0 + $0x1e0] sm:$0xff]  ;;  %v1737_v3 = vld [vmem:[%s2697_s0 + $0x1f0] sm:$0xff] }
  0x2c   :  { %v17_v4 = vld [vmem:[%s2698_s2 + $0x18] sm:$0xff]  ;;  %v1754_v9 = vld [vmem:[%s2697_s0 + $0x3f0] sm:$0xff]  ;;  %v400_v10 = vld [vmem:[%s2697_s0 + $0x408] sm:$0xff]  ;;  %v1136_v27 = vpack.c.bf16 %v1725_v63, %v1720_v62  ;;  %v1074_v28 = vpack.c.bf16 %v1737_v3, %v1732_v2 }
  0x2d   :  { %1055 = vmatpush1.bf16.msra.mxu1 %v1054_v8  ;;  %v1749_v8 = vld [vmem:[%s2697_s0 + $0x3e0] sm:$0xff]  ;;  %v402_v15 = vld [vmem:[%s2697_s0 + $0x418] sm:$0xff]  ;;  %v66_v22 = vunpack.c.h.bf16 %v17_v4  ;;  %v20_v23 = vld [vmem:[%s2698_s2 + $0x30] sm:$0xff] }
  0x2e   :  { %1119 = vmatpush1.bf16.msra.mxu0 %v1118_v13  ;;  %1057 = vmatprep.subr.bf16.mxu1 %v1056_v14  ;;  %v1134_v13 = vpack.c.bf16 %v1705_v57, %v1700_v56  ;;  %v59_v14 = vunpack.c.l.bf16 %v1602_v21  ;;  %v399_v16 = vld [vmem:[%s2697_s0 + $0x400] sm:$0xff]  ;;  %v401_v21 = vld [vmem:[%s2697_s0 + $0x410] sm:$0xff]  ;;  %v1138_v30 = vpack.c.bf16 %v1754_v9, %v1749_v8  ;;  %v1808_v35 = vpack.c.bf16 %v402_v15, %v400_v10  ;;  %v23_v40 = vld [vmem:[%s2698_s2 + $0x48] sm:$0xff] }
  0x2f   :  { %1121 = vmatprep.subr.bf16.mxu0 %v1120_v18  ;;  %v18_v17 = vld [vmem:[%s2698_s2 + $0x20] sm:$0xff]  ;;  %v61_v18 = vunpack.c.l.bf16 %v1616_v25  ;;  %v1072_v25 = vpack.c.bf16 %v1715_v61, %v1710_v59  ;;  %v405_v39 = vld [vmem:[%s2697_s0 + $0x430] sm:$0xff]  ;;  %v1821_v42 = vpack.c.bf16 %v401_v21, %v399_v16  ;;  %v72_v43 = vunpack.c.h.bf16 %v20_v23  ;;  %v408_v46 = vld [vmem:[%s2697_s0 + $0x448] sm:$0xff] }
  0x30   :  { %v403_v34 = vld [vmem:[%s2697_s0 + $0x420] sm:$0xff]  ;;  %v68_v36 = vunpack.c.h.bf16 %v18_v17  ;;  %v67_v38 = vunpack.c.l.bf16 %v18_v17  ;;  %v1819_v41 = vld [vmem:[%s2698_s2 + $0x50] sm:$0xff]  ;;  %v71_v45 = vunpack.c.l.bf16 %v20_v23  ;;  %v410_v47 = vld [vmem:[%s2697_s0 + $0x458] sm:$0xff]  ;;  %v181_v48 = vmul.f32 %v1777_v19, %v59_v14 }
  0x31   :  { %1059 = vmatpush1.bf16.msra.mxu1 %v1058_v26  ;;  %v21_v26 = vld [vmem:[%s2698_s2 + $0x38] sm:$0xff]  ;;  %v1834_v50 = vmul.f32 %v1625_v29, %v66_v22  ;;  %v80_v55 = vunpack.c.h.bf16 %v1819_v41  ;;  %v26_v56 = vld [vmem:[%s2698_s2 + $0x60] sm:$0xff]  ;;  %v1847_v57 = vld [vmem:[%s2698_s2 + $0x68] sm:$0xff]  ;;  %v1858_v62 = vpack.c.bf16 %v410_v47, %v408_v46  ;;  %v1870_v2 = vmul.f32 %v1625_v29, %v72_v43 }
  0x32   :  { %1123 = vmatpush1.bf16.msra.mxu0 %v1122_v32  ;;  %1061 = vmatprep.subr.bf16.mxu1 %v1060_v33  ;;  %v404_v32 = vld [vmem:[%s2697_s0 + $0x428] sm:$0xff]  ;;  %v406_v33 = vld [vmem:[%s2697_s0 + $0x438] sm:$0xff]  ;;  %v74_v44 = vunpack.c.h.bf16 %v21_v26  ;;  %v73_v51 = vunpack.c.l.bf16 %v21_v26  ;;  %v1856_v61 = vmul.f32 %v1780_v20, %v67_v38  ;;  %v407_v63 = vld [vmem:[%s2697_s0 + $0x440] sm:$0xff]  ;;  %v86_v14 = vunpack.c.h.bf16 %v1847_v57 }
  0x33   :  { %1125 = vmatprep.subr.bf16.mxu0 %v1124_v37  ;;  %v65_v37 = vunpack.c.l.bf16 %v17_v4  ;;  %v1836_v52 = vpack.c.bf16 %v406_v33, %v404_v32  ;;  %v409_v0 = vld [vmem:[%s2697_s0 + $0x450] sm:$0xff]  ;;  %v412_v1 = vld [vmem:[%s2697_s0 + $0x468] sm:$0xff]  ;;  %v1876_v4 = vmul.f32 %v1777_v19, %v71_v45  ;;  %v30_v10 = vld [vmem:[%s2698_s2 + $0x80] sm:$0xff]  ;;  %v83_v22 = vunpack.c.l.bf16 %v26_v56 }
  0x34   :  { %v1873_v3 = vmul.f32 %v1629_v31, %v74_v44  ;;  %v411_v15 = vld [vmem:[%s2697_s0 + $0x460] sm:$0xff]  ;;  %v413_v16 = vld [vmem:[%s2697_s0 + $0x470] sm:$0xff]  ;;  %v1904_v21 = vpack.c.bf16 %v409_v0, %v407_v63  ;;  %v92_v32 = vunpack.c.h.bf16 %v30_v10  ;;  %v416_v33 = vld [vmem:[%s2697_s0 + $0x488] sm:$0xff]  ;;  %v1938_v8 = vmul.f32 %v1629_v31, %v86_v14 }
  0x35   :  { %1063 = vmatpush1.bf16.msra.mxu1 %v1062_v49  ;;  %v1831_v49 = vmul.f32 %v1780_v20, %v61_v18  ;;  %v1853_v59 = vmul.f32 %v1777_v19, %v65_v37  ;;  %v1902_v18 = vmul.f32 %v1629_v31, %v80_v55  ;;  %v32_v23 = vld [vmem:[%s2698_s2 + $0x90] sm:$0xff]  ;;  %v1928_v37 = vpack.c.bf16 %v413_v16, %v411_v15  ;;  %v415_v9 = vld [vmem:[%s2697_s0 + $0x480] sm:$0xff]  ;;  %v2017_v15 = vld [vmem:[%s2698_s2 + $0xc8] sm:$0xff] }
  0x36   :  { %1127 = vmatpush1.bf16.msra.mxu0 %v1126_v53  ;;  %1065 = vmatprep.subr.bf16.mxu1 %v1064_v54  ;;  %v1838_v53 = vpack.c.bf16 %v405_v39, %v403_v34  ;;  %v78_v54 = vunpack.c.h.bf16 %v23_v40  ;;  %v418_v34 = vld [vmem:[%s2697_s0 + $0x498] sm:$0xff]  ;;  %v91_v39 = vunpack.c.l.bf16 %v30_v10  ;;  %v96_v43 = vunpack.c.h.bf16 %v32_v23  ;;  %v419_v0 = vld [vmem:[%s2697_s0 + $0x4a0] sm:$0xff]  ;;  %v2027_v16 = vld [vmem:[%s2698_s2 + $0x128] sm:$0xff] }
  0x37   :  { %1129 = vmatprep.subr.bf16.mxu0 %v1128_v58  ;;  %v1850_v58 = vmul.f32 %v1629_v31, %v68_v36  ;;  %v33_v36 = vld [vmem:[%s2698_s2 + $0x98] sm:$0xff]  ;;  %v1950_v44 = vmul.f32 %v1777_v19, %v83_v22  ;;  %v1952_v45 = vpack.c.bf16 %v418_v34, %v416_v33  ;;  %v95_v47 = vunpack.c.l.bf16 %v32_v23 }
  0x38   :  { %v1899_v17 = vmul.f32 %v1625_v29, %v78_v54  ;;  %v98_v46 = vunpack.c.h.bf16 %v33_v36  ;;  %v1960_v54 = vld [vmem:[%s2698_s2 + $0xa8] sm:$0xff]  ;;  %v97_v63 = vunpack.c.l.bf16 %v33_v36  ;;  %v2008_v10 = vmul.f32 %v1625_v29, %v96_v43 }
  0x39   :  { %1067 = vmatpush1.bf16.msra.mxu1 %v1066_v5  ;;  %v77_v5 = vunpack.c.l.bf16 %v23_v40  ;;  %v2035_v23 = vmul.f32 %v1777_v19, %v95_v47  ;;  %v101_v33 = vunpack.c.l.bf16 %v1960_v54  ;;  %v428_v47 = vld [vmem:[%s2697_s0 + $0x4e8] sm:$0xff] }
  0x3a   :  { %1131 = vmatpush1.bf16.msra.mxu0 %v1130_v6  ;;  %1069 = vmatprep.subr.bf16.mxu1 %v1068_v7  ;;  %v414_v6 = vld [vmem:[%s2697_s0 + $0x478] sm:$0xff]  ;;  %v2032_v22 = vmul.f32 %v1629_v31, %v98_v46 }
  0x3b   :  { %1133 = vmatprep.subr.bf16.mxu0 %v1132_v11  ;;  %v29_v7 = vld [vmem:[%s2698_s2 + $0x78] sm:$0xff]  ;;  %v1888_v11 = vmul.f32 %v1780_v20, %v73_v51  ;;  %v1909_v26 = vpack.c.bf16 %v414_v6, %v412_v1  ;;  %v1990_v1 = vmul.f32 %v1780_v20, %v91_v39  ;;  %v424_v6 = vld [vmem:[%s2697_s0 + $0x4c8] sm:$0xff] }
  0x3c   :  { %v89_v38 = vunpack.c.l.bf16 %v29_v7  ;;  %v422_v51 = vld [vmem:[%s2697_s0 + $0x4b8] sm:$0xff] }
  0x3d   :  { %1071 = vmatpush1.bf16.msra.mxu1 %v1070_v12  ;;  %v79_v12 = vunpack.c.l.bf16 %v1819_v41 }
  0x3e   :  { %1135 = vmatpush1.bf16.msra.mxu0 %v1134_v13  ;;  %1073 = vmatprep.subr.bf16.mxu1 %v1072_v25  ;;  %v84_v13 = vunpack.c.h.bf16 %v26_v56  ;;  %v85_v25 = vunpack.c.l.bf16 %v1847_v57  ;;  %v1976_v57 = vmul.f32 %v1629_v31, %v92_v32  ;;  %v425_v32 = vld [vmem:[%s2697_s0 + $0x4d0] sm:$0xff] }
  0x3f   :  { %1137 = vmatprep.subr.bf16.mxu0 %v1136_v27  ;;  %v90_v27 = vunpack.c.h.bf16 %v29_v7  ;;  %v1932_v40 = vmul.f32 %v1780_v20, %v79_v12  ;;  %v426_v7 = vld [vmem:[%s2697_s0 + $0x4d8] sm:$0xff] }
  0x40   :  { %v1935_v41 = vmul.f32 %v1625_v29, %v84_v13  ;;  %v1970_v55 = vmul.f32 %v1780_v20, %v85_v25  ;;  %v102_v13 = vunpack.c.h.bf16 %v1960_v54  ;;  %v427_v54 = vld [vmem:[%s2697_s0 + $0x4e0] sm:$0xff] }
  0x41   :  { %1075 = vmatpush1.bf16.msra.mxu1 %v1074_v28  ;;  %v1926_v28 = vmul.f32 %v1777_v19, %v77_v5  ;;  %v1973_v56 = vmul.f32 %v1625_v29, %v90_v27  ;;  %v423_v27 = vld [vmem:[%s2697_s0 + $0x4c0] sm:$0xff] }
  0x42   :  { %1139 = vmatpush1.bf16.msra.mxu0 %v1138_v30  ;;  %1192 = vmatprep.subr.bf16.mxu1 %v1808_v35  ;;  %v417_v30 = vld [vmem:[%s2697_s0 + $0x490] sm:$0xff]  ;;  %v2074_v43 = vmul.f32 %v1625_v29, %v102_v13  ;;  %v2128_v13 = vld [vmem:[%s2698_s2 + $0xd8] sm:$0xff] }
  0x43   :  { %1141 = vmatprep.subr.bf16.mxu0 %v1808_v35  ;;  %v420_v35 = vld [vmem:[%s2697_s0 + $0x4a8] sm:$0xff]  ;;  %v1992_v5 = vpack.c.bf16 %v417_v30, %v415_v9  ;;  %v134_v9 = vunpack.c.h.bf16 %v2027_v16  ;;  %v2069_v30 = vld [vmem:[%s2698_s2 + $0x140] sm:$0xff] }
  0x44   :  { %562 = vmatmul.mubr.f32.vlgmr.msra.gmra.mrb[0].mxu1 %v181_v48  ;;  %v1965_v48 = vld [vmem:[%s2698_s2 + $0xb0] sm:$0xff]  ;;  %v2010_v12 = vpack.c.bf16 %v422_v51, %v420_v35  ;;  %v2079_v35 = vpack.c.bf16 %v425_v32, %v423_v27  ;;  %v109_v51 = vunpack.c.l.bf16 %v2017_v15 }
  0x45   :  { %717 = vmatmul.mubr.f32.vlgmr.msra.gmra.mrb[0].mxu0 %v1831_v49  ;;  %567 = vmatprep.mubr.f32.mxu1 %v1834_v50  ;;  %v421_v49 = vld [vmem:[%s2697_s0 + $0x4b0] sm:$0xff]  ;;  %v1987_v50 = vmul.f32 %v1777_v19, %v89_v38  ;;  %v104_v14 = vunpack.c.h.bf16 %v1965_v48  ;;  %v103_v34 = vunpack.c.l.bf16 %v1965_v48  ;;  %v2057_v38 = vld [vmem:[%s2698_s2 + $0x138] sm:$0xff] }
  0x46   :  { %1143 = vmatpush1.bf16.msra.mxu0 %v1821_v42  ;;  %722 = vmatprep.mubr.f32.mxu0 %v1850_v58  ;;  %v2003_v58 = vld [vmem:[%s2698_s2 + $0xc0] sm:$0xff]  ;;  %v2037_v25 = vpack.c.bf16 %v421_v49, %v419_v0  ;;  %v138_v0 = vunpack.c.h.bf16 %v2057_v38  ;;  %v2114_v49 = vmul.f32 %v1777_v19, %v101_v33  ;;  %v16_v32 = vld [vmem:[%s2698_s2 + $0x10] sm:$0xff]  ;;  %v169_v33 = vsub.s32 4, %v1550_v60 }
  0x47   :  { %1205 = vmatpush1.bf16.msra.mxu1 %v1821_v42  ;;  %1145 = vmatprep.subr.bf16.mxu0 %v1836_v52  ;;  %v2022_v42 = vld [vmem:[%s2698_s2 + $0x120] sm:$0xff]  ;;  %v108_v36 = vunpack.c.h.bf16 %v2003_v58  ;;  %v107_v46 = vunpack.c.l.bf16 %v2003_v58  ;;  %v429_v58 = vld [vmem:[%s2697_s0 + $0x4f0] sm:$0xff] }
  0x48   :  { %568 = vmatmul.mubr.f32.gmra.mrb[2].mxu1 %v1853_v59  ;;  %1193 = vmatprep.subr.bf16.mxu1 %v1836_v52  ;;  %v173_v59 = vsub.s32 5, %v1550_v60  ;;  %v2049_v52 = vmul.f32 %v1780_v20, %v97_v63  ;;  %v132_v39 = vunpack.c.h.bf16 %v2022_v42  ;;  %v2098_v63 = vmul.f32 %v1629_v31, %v134_v9  ;;  %v46_v60 = vld [vmem:[%s2698_s2 + $0x100] sm:$0xff] }
  0x49   :  { %723 = vmatmul.mubr.f32.gmra.mrb[2].mxu0 %v1856_v61  ;;  %573 = vmatprep.mubr.f32.mxu1 %v1870_v2  ;;  %v2061_v61 = vpack.c.bf16 %v426_v7, %v424_v6  ;;  %v110_v2 = vunpack.c.h.bf16 %v2017_v15  ;;  %v2117_v6 = vmul.f32 %v1780_v20, %v103_v34  ;;  %v2120_v7 = vmul.f32 %v1625_v29, %v108_v36  ;;  %v432_v34 = vld [vmem:[%s2697_s0 + $0x508] sm:$0xff]  ;;  %v434_v36 = vld [vmem:[%s2697_s0 + $0x518] sm:$0xff] }
  0x4a   :  { %1147 = vmatpush1.bf16.msra.mxu0 %v1838_v53  ;;  %728 = vmatprep.mubr.f32.mxu0 %v1873_v3  ;;  %v2077_v3 = vmul.f32 %v1629_v31, %v104_v14  ;;  %v2095_v48 = vmul.f32 %v1625_v29, %v132_v39  ;;  %v2144_v27 = vmul.f32 %v1625_v29, %v138_v0  ;;  %v40_v0 = vld [vmem:[%s2698_s2 + $0xd0] sm:$0xff] }
  0x4b   :  { %1206 = vmatpush1.bf16.msra.mxu1 %v1838_v53  ;;  %1149 = vmatprep.subr.bf16.mxu0 %v1858_v62  ;;  %v430_v53 = vld [vmem:[%s2697_s0 + $0x4f8] sm:$0xff]  ;;  %v2139_v14 = vmul.f32 %v1629_v31, %v110_v2 }
  0x4c   :  { %574 = vmatmul.mubr.f32.gmra.mrb[4].mxu1 %v1876_v4  ;;  %1194 = vmatprep.subr.bf16.mxu1 %v1858_v62  ;;  %v2104_v4 = vld [vmem:[%s2698_s2 + $0x150] sm:$0xff]  ;;  %v2109_v62 = vld [vmem:[%s2698_s2 + $0x158] sm:$0xff]  ;;  %v2141_v15 = vpack.c.bf16 %v430_v53, %v428_v47  ;;  %v112_v53 = vunpack.c.h.bf16 %v40_v0 }
  0x4d   :  { %729 = vmatmul.mubr.f32.gmra.mrb[4].mxu0 %v1888_v11  ;;  %579 = vmatprep.mubr.f32.mxu1 %v1899_v17  ;;  %v2133_v11 = vld [vmem:[%s2698_s2 + $0xe0] sm:$0xff]  ;;  %v140_v17 = vunpack.c.h.bf16 %v2069_v30  ;;  %v144_v39 = vunpack.c.h.bf16 %v2104_v4  ;;  %v146_v9 = vunpack.c.h.bf16 %v2109_v62 }
  0x4e   :  { %734 = vmatprep.mubr.f32.mxu0 %v1902_v18  ;;  %1151 = vmatpush1.bf16.msra.mxu0 %v1904_v21  ;;  %v2153_v18 = vmul.f32 %v1777_v19, %v107_v46  ;;  %v2171_v46 = vpack.c.bf16 %v429_v58, %v427_v54  ;;  %v63_v54 = vunpack.c.l.bf16 %v16_v32  ;;  %v43_v58 = vld [vmem:[%s2698_s2 + $0xe8] sm:$0xff] }
  0x4f   :  { %1153 = vmatprep.subr.bf16.mxu0 %v1909_v26  ;;  %1207 = vmatpush1.bf16.msra.mxu1 %v1904_v21  ;;  %v2162_v2 = vmul.f32 %v1629_v31, %v140_v17  ;;  %v2169_v21 = vmul.f32 %v1780_v20, %v109_v51  ;;  %v19_v17 = vld [vmem:[%s2698_s2 + $0x28] sm:$0xff]  ;;  %v2188_v51 = vmul.f32 %v1629_v31, %v146_v9  ;;  %v22_v9 = vld [vmem:[%s2698_s2 + $0x40] sm:$0xff] }
  0x50   :  { %580 = vmatmul.mubr.f32.gmra.mrb[6].mxu1 %v1926_v28  ;;  %1195 = vmatprep.subr.bf16.mxu1 %v1909_v26  ;;  %v2185_v28 = vmul.f32 %v1625_v29, %v144_v39  ;;  %v64_v26 = vunpack.c.h.bf16 %v16_v32  ;;  %v2201_v39 = vrot.slane %v1611_v24, %v173_v59  ;;  %v69_v32 = vunpack.c.l.bf16 %v19_v17 }
  0x51   :  { %735 = vmatmul.mubr.f32.gmra.mrb[6].mxu0 %v1932_v40  ;;  %585 = vmatprep.mubr.f32.mxu1 %v1935_v41  ;;  %v2196_v41 = vpack.c.bf16 %v434_v36, %v432_v34  ;;  %v2209_v40 = vrot.slane %v1611_v24, %v169_v33  ;;  %v70_v34 = vunpack.c.h.bf16 %v19_v17  ;;  %v117_v36 = vunpack.c.l.bf16 %v43_v58 }
  0x52   :  { %740 = vmatprep.mubr.f32.mxu0 %v1938_v8  ;;  %1155 = vmatpush1.bf16.msra.mxu0 %v1928_v37  ;;  %v111_v8 = vunpack.c.l.bf16 %v40_v0  ;;  %v2217_v59 = vmul.f32 %v2201_v39, %v64_v26  ;;  %v2222_v24 = vmul.f32 %v2201_v39, %v112_v53  ;;  %v25_v0 = vld [vmem:[%s2698_s2 + $0x58] sm:$0xff]  ;;  %v124_v26 = vunpack.c.h.bf16 %v46_v60 }
  0x53   :  { %1208 = vmatpush1.bf16.msra.mxu1 %v1928_v37  ;;  %1157 = vmatprep.subr.bf16.mxu0 %v1952_v45  ;;  %v118_v37 = vunpack.c.h.bf16 %v43_v58  ;;  %v2225_v33 = vmul.f32 %v2209_v40, %v63_v54  ;;  %v2245_v17 = vmul.f32 %v2209_v40, %v69_v32  ;;  %v28_v54 = vld [vmem:[%s2698_s2 + $0x70] sm:$0xff]  ;;  %v82_v32 = vunpack.c.h.bf16 %v25_v0 }
  0x54   :  { %586 = vmatmul.mubr.f32.gmra.mrb[8].mxu1 %v1950_v44  ;;  %1196 = vmatprep.subr.bf16.mxu1 %v1952_v45  ;;  %v2228_v44 = vmul.f32 %v2209_v40, %v111_v8  ;;  %v76_v45 = vunpack.c.h.bf16 %v22_v9  ;;  %v75_v8 = vunpack.c.l.bf16 %v22_v9 }
  0x55   :  { %741 = vmatmul.mubr.f32.gmra.mrb[8].mxu0 %v1970_v55  ;;  %591 = vmatprep.mubr.f32.mxu1 %v1973_v56  ;;  %v49_v55 = vld [vmem:[%s2698_s2 + $0x118] sm:$0xff]  ;;  %v2239_v56 = vmul.f32 %v2201_v39, %v70_v34  ;;  %v2242_v53 = vmul.f32 %v2201_v39, %v118_v37  ;;  %v123_v34 = vunpack.c.l.bf16 %v46_v60  ;;  %v52_v37 = vld [vmem:[%s2698_s2 + $0x130] sm:$0xff] }
  0x56   :  { %746 = vmatprep.mubr.f32.mxu0 %v1976_v57  ;;  %1159 = vmatpush1.bf16.msra.mxu0 %v1992_v5  ;;  %v2253_v57 = vmul.f32 %v2209_v40, %v117_v36  ;;  %v2256_v58 = vmul.f32 %v2201_v39, %v76_v45  ;;  %v130_v47 = vunpack.c.h.bf16 %v49_v55  ;;  %v81_v36 = vunpack.c.l.bf16 %v25_v0  ;;  %v55_v0 = vld [vmem:[%s2698_s2 + $0x148] sm:$0xff] }
  0x57   :  { %1209 = vmatpush1.bf16.msra.mxu1 %v1992_v5  ;;  %1161 = vmatprep.subr.bf16.mxu0 %v2010_v12  ;;  %v2264_v5 = vmul.f32 %v2201_v39, %v124_v26  ;;  %v2269_v9 = vmul.f32 %v2209_v40, %v75_v8  ;;  %v2272_v60 = vmul.f32 %v2209_v40, %v123_v34  ;;  %v129_v45 = vunpack.c.l.bf16 %v49_v55  ;;  %v34_v8 = vld [vmem:[%s2698_s2 + $0xa0] sm:$0xff] }
  0x58   :  { %592 = vmatmul.mubr.f32.gmra.mrb[10].mxu1 %v1987_v50  ;;  %1197 = vmatprep.subr.bf16.mxu1 %v2010_v12  ;;  %v88_v50 = vunpack.c.h.bf16 %v28_v54  ;;  %v31_v12 = vld [vmem:[%s2698_s2 + $0x88] sm:$0xff]  ;;  %v2289_v55 = vmul.f32 %v2209_v40, %v81_v36  ;;  %v136_v26 = vunpack.c.h.bf16 %v52_v37  ;;  %v58_v36 = vld [vmem:[%s2698_s2 + $0x160] sm:$0xff] }
  0x59   :  { %747 = vmatmul.mubr.f32.gmra.mrb[10].mxu0 %v1990_v1  ;;  %597 = vmatprep.mubr.f32.mxu1 %v2008_v10  ;;  %v2283_v1 = vmul.f32 %v2201_v39, %v82_v32  ;;  %v2286_v10 = vmul.f32 %v2201_v39, %v130_v47  ;;  %v87_v47 = vunpack.c.l.bf16 %v28_v54  ;;  %v135_v32 = vunpack.c.l.bf16 %v52_v37 }
  0x5a   :  { %752 = vmatprep.mubr.f32.mxu0 %v2032_v22  ;;  %1163 = vmatpush1.bf16.msra.mxu0 %v2037_v25  ;;  %2702 = vst [vmem:[#allocation3_spill] sm:$0xff] %v2289_v55  ;;  %v2297_v22 = vmul.f32 %v2209_v40, %v129_v45  ;;  %v2300_v34 = vmul.f32 %v2201_v39, %v88_v50  ;;  %v93_v45 = vunpack.c.l.bf16 %v31_v12  ;;  %v141_v50 = vunpack.c.l.bf16 %v55_v0 }
  0x5b   :  { %2701 = vst [vmem:[#allocation2_spill] sm:$0xff] %v2283_v1  ;;  %1165 = vmatprep.subr.bf16.mxu0 %v2061_v61  ;;  %1210 = vmatpush1.bf16.msra.mxu1 %v2037_v25  ;;  %v2308_v55 = vmul.f32 %v2201_v39, %v136_v26  ;;  %v94_v25 = vunpack.c.h.bf16 %v31_v12  ;;  %v142_v1 = vunpack.c.h.bf16 %v55_v0  ;;  %v2313_v54 = vmul.f32 %v2209_v40, %v87_v47  ;;  %v433_v47 = vld [vmem:[%s2697_s0 + $0x510] sm:$0xff] }
  0x5c   :  { %598 = vmatmul.mubr.f32.gmra.mrb[12].mxu1 %v2035_v23  ;;  %1198 = vmatprep.subr.bf16.mxu1 %v2061_v61  ;;  %v2316_v37 = vmul.f32 %v2209_v40, %v135_v32  ;;  %v100_v23 = vunpack.c.h.bf16 %v34_v8  ;;  %v37_v61 = vld [vmem:[%s2698_s2 + $0xb8] sm:$0xff]  ;;  %v2335_v0 = vmul.f32 %v2209_v40, %v93_v45  ;;  %v148_v26 = vunpack.c.h.bf16 %v58_v36 }
  0x5d   :  { %753 = vmatmul.mubr.f32.gmra.mrb[12].mxu0 %v2049_v52  ;;  %603 = vmatprep.mubr.f32.mxu1 %v2074_v43  ;;  %v2326_v52 = vld [vmem:[%s2698_s2 + $0xf0] sm:$0xff]  ;;  %v2329_v43 = vmul.f32 %v2201_v39, %v94_v25  ;;  %v2332_v12 = vmul.f32 %v2201_v39, %v142_v1  ;;  %v2348_v1 = vld [vmem:[%s2698_s2 + $0xf8] sm:$0xff]  ;;  %v2351_v32 = vmul.f32 %v2209_v40, %v141_v50  ;;  %v99_v25 = vunpack.c.l.bf16 %v34_v8 }
  0x5e   :  { %758 = vmatprep.mubr.f32.mxu0 %v2077_v3  ;;  %1167 = vmatpush1.bf16.msra.mxu0 %v2079_v35  ;;  %2705 = vst [vmem:[#allocation6_spill] sm:$0xff] %v2335_v0  ;;  %v431_v3 = vld [vmem:[%s2697_s0 + $0x500] sm:$0xff]  ;;  %v147_v45 = vunpack.c.l.bf16 %v58_v36  ;;  %v2708_v0 = vunpack.c.h.bf16 %v2128_v13  ;;  %v438_v50 = vld [vmem:[%s2697_s0 + $0x538] sm:$0xff]  ;;  %v106_v8 = vunpack.c.h.bf16 %v37_v61  ;;  %v105_v36 = vunpack.c.l.bf16 %v37_v61 }
  0x5f   :  { %2703 = vst [vmem:[#allocation4_spill] sm:$0xff] %v2329_v43  ;;  %2704 = vst [vmem:[#allocation5_spill] sm:$0xff] %v2332_v12  ;;  %1211 = vmatpush1.bf16.msra.mxu1 %v2079_v35  ;;  %1169 = vmatprep.subr.bf16.mxu0 %v2141_v15  ;;  %v2354_v35 = vmul.f32 %v2201_v39, %v100_v23  ;;  %v436_v12 = vld [vmem:[%s2697_s0 + $0x528] sm:$0xff]  ;;  %v2368_v23 = vmul.f32 %v2201_v39, %v148_v26 }
  0x60   :  { %2706 = vst [vmem:[#allocation7_spill] sm:$0xff] %v2351_v32  ;;  %604 = vmatmul.mubr.f32.gmra.mrb[14].mxu1 %v2114_v49  ;;  %v236_v43 = vmul.f32 %v1625_v29, %v2708_v0  ;;  %1199 = vmatprep.subr.bf16.mxu1 %v2141_v15  ;;  %v2709_v49 = vunpack.c.h.bf16 %v2133_v11  ;;  %v120_v0 = vunpack.c.h.bf16 %v2326_v52  ;;  %v2380_v32 = vmul.f32 %v2209_v40, %v147_v45  ;;  %v440_v45 = vld [vmem:[%s2697_s0 + $0x548] sm:$0xff] }
  0x61   :  { %2707 = vst [vmem:[#allocation8_spill] sm:$0xff] %v2354_v35  ;;  %759 = vmatmul.mubr.f32.gmra.mrb[14].mxu0 %v2117_v6  ;;  %609 = vmatprep.mubr.f32.mxu1 %v2120_v7  ;;  %v2377_v35 = vmul.f32 %v2209_v40, %v99_v25  ;;  %v1174_v61 = vpack.c.bf16 %v433_v47, %v431_v3  ;;  %v122_v6 = vunpack.c.h.bf16 %v2348_v1  ;;  %v47_v7 = vld [vmem:[%s2698_s2 + $0x108] sm:$0xff]  ;;  %v48_v3 = vld [vmem:[%s2698_s2 + $0x110] sm:$0xff]  ;;  %v435_v47 = vld [vmem:[%s2697_s0 + $0x520] sm:$0xff] }
  0x62   :  { %v238_v15 = vmul.f32 %v1629_v31, %v2709_v49  ;;  %764 = vmatprep.mubr.f32.mxu0 %v2139_v14  ;;  %1171 = vmatpush1.bf16.msra.mxu0 %v2171_v46  ;;  %v2389_v26 = vmul.f32 %v2201_v39, %v106_v8  ;;  %v2392_v25 = vmul.f32 %v2209_v40, %v105_v36  ;;  %v437_v39 = vld [vmem:[%s2697_s0 + $0x530] sm:$0xff]  ;;  %v2711_v40 = vunpack.c.l.bf16 %v2128_v13 }
  0x63   :  { %1212 = vmatpush1.bf16.msra.mxu1 %v2171_v46  ;;  %1173 = vmatprep.subr.bf16.mxu0 %v2196_v41  ;;  %v1176_v14 = vpack.c.bf16 %v438_v50, %v436_v12  ;;  %v119_v12 = vunpack.c.l.bf16 %v2326_v52  ;;  %v442_v50 = vld [vmem:[%s2697_s0 + $0x558] sm:$0xff]  ;;  %v242_v8 = vmul.f32 %v1625_v29, %v120_v0  ;;  %v121_v52 = vunpack.c.l.bf16 %v2348_v1 }
  0x64   :  { %2710 = vst [vmem:[#allocation9_spill] sm:$0xff] %v2392_v25  ;;  %610 = vmatmul.mubr.f32.gmra.mrb[16].mxu1 %v2153_v18  ;;  %v235_v46 = vmul.f32 %v1777_v19, %v2711_v40  ;;  %1200 = vmatprep.subr.bf16.mxu1 %v2196_v41  ;;  %v2712_v18 = vunpack.c.l.bf16 %v2133_v11  ;;  %v126_v41 = vunpack.c.h.bf16 %v47_v7  ;;  %v244_v36 = vmul.f32 %v1629_v31, %v122_v6  ;;  %v439_v11 = vld [vmem:[%s2697_s0 + $0x540] sm:$0xff]  ;;  %v446_v0 = vld [vmem:[%s2697_s0 + $0x578] sm:$0xff] }
  0x65   :  { %765 = vmatmul.mubr.f32.gmra.mrb[16].mxu0 %v2169_v21  ;;  %615 = vmatprep.mubr.f32.mxu1 %v236_v43  ;;  %v128_v49 = vunpack.c.h.bf16 %v48_v3  ;;  %v1178_v40 = vpack.c.bf16 %v437_v39, %v435_v47  ;;  %v1180_v25 = vpack.c.bf16 %v442_v50, %v440_v45  ;;  %v441_v21 = vld [vmem:[%s2697_s0 + $0x550] sm:$0xff]  ;;  %v241_v43 = vmul.f32 %v1777_v19, %v119_v12  ;;  %v450_v45 = vld [vmem:[%s2697_s0 + $0x598] sm:$0xff] }
  0x66   :  { %v237_v13 = vmul.f32 %v1780_v20, %v2712_v18  ;;  %770 = vmatprep.mubr.f32.mxu0 %v238_v15  ;;  %1175 = vmatpush1.bf16.msra.mxu0 %v1174_v61  ;;  %v125_v1 = vunpack.c.l.bf16 %v47_v7  ;;  %v444_v15 = vld [vmem:[%s2697_s0 + $0x568] sm:$0xff]  ;;  %v248_v6 = vmul.f32 %v1625_v29, %v126_v41  ;;  %v127_v47 = vunpack.c.l.bf16 %v48_v3  ;;  %v445_v12 = vld [vmem:[%s2697_s0 + $0x570] sm:$0xff] }
  0x67   :  { %1213 = vmatpush1.bf16.msra.mxu1 %v1174_v61  ;;  %1177 = vmatprep.subr.bf16.mxu0 %v1176_v14  ;;  %v243_v61 = vmul.f32 %v1780_v20, %v121_v52  ;;  %v250_v39 = vmul.f32 %v1629_v31, %v128_v49  ;;  %v1182_v7 = vpack.c.bf16 %v441_v21, %v439_v11  ;;  %v131_v3 = vunpack.c.l.bf16 %v2022_v42  ;;  %v448_v31 = vld [vmem:[%s2697_s0 + $0x588] sm:$0xff] }
  0x68   :  { %616 = vmatmul.mubr.f32.gmra.mrb[18].mxu1 %v235_v46  ;;  %1201 = vmatprep.subr.bf16.mxu1 %v1176_v14  ;;  %v1184_v14 = vpack.c.bf16 %v446_v0, %v444_v15  ;;  %v443_v46 = vld [vmem:[%s2697_s0 + $0x560] sm:$0xff]  ;;  %v247_v29 = vmul.f32 %v1777_v19, %v125_v1  ;;  %v249_v50 = vmul.f32 %v1780_v20, %v127_v47  ;;  %v133_v18 = vunpack.c.l.bf16 %v2027_v16 }
  0x69   :  { %771 = vmatmul.mubr.f32.gmra.mrb[18].mxu0 %v237_v13  ;;  %621 = vmatprep.mubr.f32.mxu1 %v242_v8  ;;  %v1186_v13 = vpack.c.bf16 %v445_v12, %v443_v46  ;;  %v1188_v42 = vpack.c.bf16 %v450_v45, %v448_v31  ;;  %v449_v8 = vld [vmem:[%s2697_s0 + $0x590] sm:$0xff]  ;;  %v253_v52 = vmul.f32 %v1777_v19, %v131_v3  ;;  %v137_v41 = vunpack.c.l.bf16 %v2057_v38 }
  0x6a   :  { %776 = vmatprep.mubr.f32.mxu0 %v244_v36  ;;  %1179 = vmatpush1.bf16.msra.mxu0 %v1178_v40  ;;  %v255_v16 = vmul.f32 %v1780_v20, %v133_v18  ;;  %v139_v36 = vunpack.c.l.bf16 %v2069_v30  ;;  %v143_v11 = vunpack.c.l.bf16 %v2104_v4  ;;  %v2715_v4 = vld [vmem:[#allocation5_spill] sm:$0xff] }
  0x6b   :  { %1214 = vmatpush1.bf16.msra.mxu1 %v1178_v40  ;;  %1181 = vmatprep.subr.bf16.mxu0 %v1180_v25  ;;  %v259_v40 = vmul.f32 %v1777_v19, %v137_v41 }
  0x6c   :  { %622 = vmatmul.mubr.f32.gmra.mrb[20].mxu1 %v241_v43  ;;  %1202 = vmatprep.subr.bf16.mxu1 %v1180_v25  ;;  %v447_v25 = vld [vmem:[%s2697_s0 + $0x580] sm:$0xff]  ;;  %v261_v38 = vmul.f32 %v1780_v20, %v139_v36  ;;  %v265_v30 = vmul.f32 %v1777_v19, %v143_v11 }
  0x6d   :  { %777 = vmatmul.mubr.f32.gmra.mrb[20].mxu0 %v243_v61  ;;  %627 = vmatprep.mubr.f32.mxu1 %v248_v6  ;;  %v1190_v49 = vpack.c.bf16 %v449_v8, %v447_v25  ;;  %v2713_v19 = vld [vmem:[#allocation2_spill] sm:$0xff] }
  0x6e   :  { %782 = vmatprep.mubr.f32.mxu0 %v250_v39  ;;  %1183 = vmatpush1.bf16.msra.mxu0 %v1182_v7 }
  0x6f   :  { %1215 = vmatpush1.bf16.msra.mxu1 %v1182_v7  ;;  %1185 = vmatprep.subr.bf16.mxu0 %v1184_v14 }
  0x70   :  { %628 = vmatmul.mubr.f32.gmra.mrb[22].mxu1 %v247_v29  ;;  %1203 = vmatprep.subr.bf16.mxu1 %v1184_v14 }
  0x71   :  { %783 = vmatmul.mubr.f32.gmra.mrb[22].mxu0 %v249_v50  ;;  %633 = vmatprep.mubr.f32.mxu1 %v2095_v48  ;;  %v145_v48 = vunpack.c.l.bf16 %v2109_v62  ;;  %v2716_v62 = vld [vmem:[#allocation4_spill] sm:$0xff] }
  0x72   :  { %788 = vmatprep.mubr.f32.mxu0 %v2098_v63  ;;  %1187 = vmatpush1.bf16.msra.mxu0 %v1186_v13 }
  0x73   :  { %1216 = vmatpush1.bf16.msra.mxu1 %v1186_v13  ;;  %1189 = vmatprep.subr.bf16.mxu0 %v1188_v42  ;;  %v267_v63 = vmul.f32 %v1780_v20, %v145_v48  ;;  %v2714_v20 = vld [vmem:[#allocation3_spill] sm:$0xff] }
  0x74   :  { %634 = vmatmul.mubr.f32.gmra.mrb[24].mxu1 %v253_v52  ;;  %1204 = vmatprep.subr.bf16.mxu1 %v1188_v42 }
  0x75   :  { %789 = vmatmul.mubr.f32.gmra.mrb[24].mxu0 %v255_v16  ;;  %639 = vmatprep.mubr.f32.mxu1 %v2144_v27  ;;  %v2717_v27 = vld [vmem:[#allocation7_spill] sm:$0xff] }
  0x76   :  { %794 = vmatprep.mubr.f32.mxu0 %v2162_v2  ;;  %1191 = vmatpush1.bf16.msra.mxu0 %v1190_v49  ;;  %v2718_v2 = vld [vmem:[#allocation6_spill] sm:$0xff] }
  0x77   :  { %1217 = vmatpush1.bf16.msra.mxu1 %v1190_v49 }
  0x78   :  { %640 = vmatmul.mubr.f32.gmra.mrb[26].mxu1 %v259_v40 }
  0x79   :  { %795 = vmatmul.mubr.f32.gmra.mrb[26].mxu0 %v261_v38  ;;  %645 = vmatprep.mubr.f32.mxu1 %v2185_v28  ;;  %v2719_v28 = vld [vmem:[#allocation8_spill] sm:$0xff] }
  0x7a   :  { %800 = vmatprep.mubr.f32.mxu0 %v2188_v51  ;;  %v2720_v51 = vld [vmem:[#allocation9_spill] sm:$0xff] }
  0x7c   :  { %646 = vmatmul.mubr.f32.gmra.mrb[28].mxu1 %v265_v30 }
  0x7d   :  { %801 = vmatmul.mubr.f32.gmra.mrb[28].mxu0 %v267_v63  ;;  %1005 = vmatprep.mubr.msk.f32.mxu1 %vm451_vm0, %v2222_v24 }
  0x7e   :  { %997 = vmatprep.mubr.msk.f32.mxu0 %vm451_vm0, %v2217_v59 }
  0x80   :  { %920 = vmatmul.mubr.f32.vlgmr.msra.gmra.mrb[30].mxu1 %v2228_v44 }
  0x81   :  { %872 = vmatmul.mubr.f32.vlgmr.msra.gmra.mrb[0].mxu0 %v2225_v33  ;;  %1006 = vmatprep.mubr.msk.f32.mxu1 %vm451_vm0, %v2242_v53 }
  0x82   :  { %998 = vmatprep.mubr.msk.f32.mxu0 %vm451_vm0, %v2239_v56 }
  0x84   :  { %926 = vmatmul.mubr.f32.gmra.mrb[32].mxu1 %v2253_v57 }
  0x85   :  { %878 = vmatmul.mubr.f32.gmra.mrb[2].mxu0 %v2245_v17  ;;  %1007 = vmatprep.mubr.msk.f32.mxu1 %vm451_vm0, %v2264_v5 }
  0x86   :  { %999 = vmatprep.mubr.msk.f32.mxu0 %vm451_vm0, %v2256_v58 }
  0x88   :  { %932 = vmatmul.mubr.f32.gmra.mrb[34].mxu1 %v2272_v60 }
  0x89   :  { %884 = vmatmul.mubr.f32.gmra.mrb[4].mxu0 %v2269_v9  ;;  %1008 = vmatprep.mubr.msk.f32.mxu1 %vm451_vm0, %v2286_v10 }
  0x8a   :  { %1000 = vmatprep.mubr.msk.f32.mxu0 %vm451_vm0, %v2713_v19 }
  0x8c   :  { %938 = vmatmul.mubr.f32.gmra.mrb[36].mxu1 %v2297_v22 }
  0x8d   :  { %890 = vmatmul.mubr.f32.gmra.mrb[6].mxu0 %v2714_v20  ;;  %1009 = vmatprep.mubr.msk.f32.mxu1 %vm451_vm0, %v2308_v55 }
  0x8e   :  { %1001 = vmatprep.mubr.msk.f32.mxu0 %vm451_vm0, %v2300_v34 }
  0x90   :  { %944 = vmatmul.mubr.f32.gmra.mrb[38].mxu1 %v2316_v37 }
  0x91   :  { %896 = vmatmul.mubr.f32.gmra.mrb[8].mxu0 %v2313_v54  ;;  %1010 = vmatprep.mubr.msk.f32.mxu1 %vm451_vm0, %v2715_v4 }
  0x92   :  { %1002 = vmatprep.mubr.msk.f32.mxu0 %vm451_vm0, %v2716_v62 }
  0x94   :  { %950 = vmatmul.mubr.f32.gmra.mrb[40].mxu1 %v2717_v27 }
  0x95   :  { %902 = vmatmul.mubr.f32.gmra.mrb[10].mxu0 %v2718_v2  ;;  %1011 = vmatprep.mubr.msk.f32.mxu1 %vm451_vm0, %v2368_v23 }
  0x96   :  { %1003 = vmatprep.mubr.msk.f32.mxu0 %vm451_vm0, %v2719_v28 }
  0x98   :  { %956 = vmatmul.mubr.f32.gmra.mrb[42].mxu1 %v2380_v32 }
  0x99   :  { %908 = vmatmul.mubr.f32.gmra.mrb[12].mxu0 %v2377_v35 }
  0x9a   :  { %1004 = vmatprep.mubr.msk.f32.mxu0 %vm451_vm0, %v2389_v26 }
  0x9d   :  { %914 = vmatmul.mubr.f32.gmra.mrb[14].mxu0 %v2720_v51 }
 0x117   :  { %v2523_v59 = vpop.f32.mrb[0].mxu1 }
 0x118   :  { %v2525_v24 = vpop.f32.mrb[1].mxu1 }
 0x11b   :  { %v2527_v33 = vpop.f32.mrb[2].mxu1 }
 0x11c   :  { %v2529_v44 = vpop.f32.mrb[3].mxu1 }
 0x11f   :  { %v2531_v56 = vpop.f32.mrb[4].mxu1 }
 0x120   :  { %v2533_v53 = vpop.f32.mrb[5].mxu1 }
 0x123   :  { %v2535_v17 = vpop.f32.mrb[6].mxu1 }
 0x124   :  { %v2537_v57 = vpop.f32.mrb[7].mxu1 }
 0x127   :  { %v2539_v58 = vpop.f32.mrb[8].mxu1 }
 0x128   :  { %v2541_v5 = vpop.f32.mrb[9].mxu1 }
 0x12b   :  { %v2543_v9 = vpop.f32.mrb[10].mxu1 }
 0x12c   :  { %v2545_v60 = vpop.f32.mrb[11].mxu1 }
 0x12f   :  { %v2547_v10 = vpop.f32.mrb[12].mxu1 }
 0x130   :  { %v2549_v55 = vpop.f32.mrb[13].mxu1 }
 0x133   :  { %v2551_v22 = vpop.f32.mrb[14].mxu1 }
 0x134   :  { %v2553_v34 = vpop.f32.mrb[15].mxu1 }
 0x137   :  { %v611_v54 = vpop.f32.mrb[16].mxu1 }
 0x138   :  { %v766_v37 = vpop.f32.mrb[16].mxu0  ;;  %v613_v32 = vpop.f32.mrb[17].mxu1 }
 0x139   :  { %v767_v35 = vadd.f32 %v766_v37, %v611_v54  ;;  %v768_v23 = vpop.f32.mrb[17].mxu0 }
 0x13a   :  { %v769_v26 = vadd.f32 %v768_v23, %v613_v32 }
 0x13b   :  { %v617_v21 = vpop.f32.mrb[18].mxu1 }
 0x13c   :  { %v772_v43 = vpop.f32.mrb[18].mxu0  ;;  %v619_v1 = vpop.f32.mrb[19].mxu1 }
 0x13d   :  { %v773_v15 = vadd.f32 %v772_v43, %v617_v21  ;;  %v774_v0 = vpop.f32.mrb[19].mxu0 }
 0x13e   :  { %v775_v61 = vadd.f32 %v774_v0, %v619_v1 }
 0x13f   :  { %v623_v6 = vpop.f32.mrb[20].mxu1 }
 0x140   :  { %v778_v47 = vpop.f32.mrb[20].mxu0  ;;  %v625_v39 = vpop.f32.mrb[21].mxu1 }
 0x141   :  { %v779_v7 = vadd.f32 %v778_v47, %v623_v6  ;;  %v780_v14 = vpop.f32.mrb[21].mxu0 }
 0x142   :  { %v781_v46 = vadd.f32 %v780_v14, %v625_v39 }
 0x143   :  { %v629_v12 = vpop.f32.mrb[22].mxu1 }
 0x144   :  { %v784_v29 = vpop.f32.mrb[22].mxu0  ;;  %v631_v3 = vpop.f32.mrb[23].mxu1 }
 0x145   :  { %v785_v31 = vadd.f32 %v784_v29, %v629_v12  ;;  %v786_v45 = vpop.f32.mrb[23].mxu0 }
 0x146   :  { %v2555_v50 = vadd.f32 %v786_v45, %v631_v3 }
 0x147   :  { %v635_v18 = vpop.f32.mrb[24].mxu1 }
 0x148   :  { %v790_v13 = vpop.f32.mrb[24].mxu0  ;;  %v637_v42 = vpop.f32.mrb[25].mxu1 }
 0x149   :  { %v2557_v25 = vadd.f32 %v790_v13, %v635_v18  ;;  %v792_v8 = vpop.f32.mrb[25].mxu0 }
 0x14a   :  { %v2559_v52 = vadd.f32 %v792_v8, %v637_v42 }
 0x14b   :  { %v641_v41 = vpop.f32.mrb[26].mxu1 }
 0x14c   :  { %v796_v16 = vpop.f32.mrb[26].mxu0  ;;  %v643_v36 = vpop.f32.mrb[27].mxu1 }
 0x14d   :  { %v2561_v49 = vadd.f32 %v796_v16, %v641_v41  ;;  %v798_v40 = vpop.f32.mrb[27].mxu0 }
 0x14e   :  { %v2563_v11 = vadd.f32 %v798_v40, %v643_v36 }
 0x14f   :  { %v647_v38 = vpop.f32.mrb[28].mxu1 }
 0x150   :  { %v802_v48 = vpop.f32.mrb[28].mxu0  ;;  %v649_v30 = vpop.f32.mrb[29].mxu1 }
 0x151   :  { %v2565_v63 = vadd.f32 %v802_v48, %v647_v38  ;;  %v804_v19 = vpop.f32.mrb[29].mxu0 }
 0x152   :  { %v2567_v20 = vadd.f32 %v804_v19, %v649_v30 }
 0x153   :  { %v921_v4 = vpop.f32.mrb[30].mxu1 }
 0x154   :  { %v873_v62 = vpop.f32.mrb[0].mxu0  ;;  %v922_v27 = vadd.f32 %v921_v4, %v767_v35  ;;  %v923_v2 = vpop.f32.mrb[31].mxu1 }
 0x155   :  { %v1218_v28 = vadd.f32 %v873_v62, %v2523_v59  ;;  %v875_v51 = vpop.f32.mrb[1].mxu0  ;;  %v924_v54 = vadd.f32 %v923_v2, %v769_v26 }
 0x156   :  { %979 = vst [vmem:[%s2700_s3 + $0x80] sm:$0xff] %v922_v27  ;;  %v1219_v37 = vadd.f32 %v875_v51, %v2525_v24 }
 0x157   :  { %962 = vst [vmem:[%s2700_s3] sm:$0xff] %v1218_v28  ;;  %980 = vst.msk [vmem:[%s2700_s3 + $0x88] sm:$0xff] %vm963_vm1, %v924_v54  ;;  %v927_v32 = vpop.f32.mrb[32].mxu1 }
 0x158   :  { %964 = vst.msk [vmem:[%s2700_s3 + $0x8] sm:$0xff] %vm963_vm1, %v1219_v37  ;;  %v879_v59 = vpop.f32.mrb[2].mxu0  ;;  %v928_v35 = vadd.f32 %v927_v32, %v773_v15  ;;  %v929_v23 = vpop.f32.mrb[33].mxu1 }
 0x159   :  { %v1220_v24 = vadd.f32 %v879_v59, %v2527_v33  ;;  %v881_v26 = vpop.f32.mrb[3].mxu0  ;;  %v930_v21 = vadd.f32 %v929_v23, %v775_v61 }
 0x15a   :  { %981 = vst [vmem:[%s2700_s3 + $0x90] sm:$0xff] %v928_v35  ;;  %v1221_v43 = vadd.f32 %v881_v26, %v2529_v44 }
 0x15b   :  { %965 = vst [vmem:[%s2700_s3 + $0x10] sm:$0xff] %v1220_v24  ;;  %982 = vst.msk [vmem:[%s2700_s3 + $0x98] sm:$0xff] %vm963_vm1, %v930_v21  ;;  %v933_v1 = vpop.f32.mrb[34].mxu1 }
 0x15c   :  { %966 = vst.msk [vmem:[%s2700_s3 + $0x18] sm:$0xff] %vm963_vm1, %v1221_v43  ;;  %v885_v33 = vpop.f32.mrb[4].mxu0  ;;  %v934_v15 = vadd.f32 %v933_v1, %v779_v7  ;;  %v935_v0 = vpop.f32.mrb[35].mxu1 }
 0x15d   :  { %v1222_v44 = vadd.f32 %v885_v33, %v2531_v56  ;;  %v887_v61 = vpop.f32.mrb[5].mxu0  ;;  %v936_v6 = vadd.f32 %v935_v0, %v781_v46 }
 0x15e   :  { %983 = vst [vmem:[%s2700_s3 + $0xa0] sm:$0xff] %v934_v15  ;;  %v1223_v47 = vadd.f32 %v887_v61, %v2533_v53 }
 0x15f   :  { %967 = vst [vmem:[%s2700_s3 + $0x20] sm:$0xff] %v1222_v44  ;;  %984 = vst.msk [vmem:[%s2700_s3 + $0xa8] sm:$0xff] %vm963_vm1, %v936_v6  ;;  %v939_v39 = vpop.f32.mrb[36].mxu1 }
 0x160   :  { %968 = vst.msk [vmem:[%s2700_s3 + $0x28] sm:$0xff] %vm963_vm1, %v1223_v47  ;;  %v891_v56 = vpop.f32.mrb[6].mxu0  ;;  %v940_v7 = vadd.f32 %v939_v39, %v785_v31  ;;  %v941_v14 = vpop.f32.mrb[37].mxu1 }
 0x161   :  { %v1224_v53 = vadd.f32 %v891_v56, %v2535_v17  ;;  %v893_v46 = vpop.f32.mrb[7].mxu0  ;;  %v942_v12 = vadd.f32 %v941_v14, %v2555_v50 }
 0x162   :  { %985 = vst [vmem:[%s2700_s3 + $0xb0] sm:$0xff] %v940_v7  ;;  %v1225_v29 = vadd.f32 %v893_v46, %v2537_v57 }
 0x163   :  { %969 = vst [vmem:[%s2700_s3 + $0x30] sm:$0xff] %v1224_v53  ;;  %986 = vst.msk [vmem:[%s2700_s3 + $0xb8] sm:$0xff] %vm963_vm1, %v942_v12  ;;  %v945_v3 = vpop.f32.mrb[38].mxu1 }
 0x164   :  { %970 = vst.msk [vmem:[%s2700_s3 + $0x38] sm:$0xff] %vm963_vm1, %v1225_v29  ;;  %v897_v17 = vpop.f32.mrb[8].mxu0  ;;  %v946_v31 = vadd.f32 %v945_v3, %v2557_v25  ;;  %v947_v45 = vpop.f32.mrb[39].mxu1 }
 0x165   :  { %v1226_v57 = vadd.f32 %v897_v17, %v2539_v58  ;;  %v899_v50 = vpop.f32.mrb[9].mxu0  ;;  %v948_v18 = vadd.f32 %v947_v45, %v2559_v52 }
 0x166   :  { %987 = vst [vmem:[%s2700_s3 + $0xc0] sm:$0xff] %v946_v31  ;;  %v1227_v13 = vadd.f32 %v899_v50, %v2541_v5 }
 0x167   :  { %971 = vst [vmem:[%s2700_s3 + $0x40] sm:$0xff] %v1226_v57  ;;  %988 = vst.msk [vmem:[%s2700_s3 + $0xc8] sm:$0xff] %vm963_vm1, %v948_v18  ;;  %v951_v42 = vpop.f32.mrb[40].mxu1 }
 0x168   :  { %972 = vst.msk [vmem:[%s2700_s3 + $0x48] sm:$0xff] %vm963_vm1, %v1227_v13  ;;  %v903_v58 = vpop.f32.mrb[10].mxu0  ;;  %v952_v25 = vadd.f32 %v951_v42, %v2561_v49  ;;  %v953_v8 = vpop.f32.mrb[41].mxu1 }
 0x169   :  { %v1228_v5 = vadd.f32 %v903_v58, %v2543_v9  ;;  %v905_v52 = vpop.f32.mrb[11].mxu0  ;;  %v954_v41 = vadd.f32 %v953_v8, %v2563_v11 }
 0x16a   :  { %989 = vst [vmem:[%s2700_s3 + $0xd0] sm:$0xff] %v952_v25  ;;  %v1229_v16 = vadd.f32 %v905_v52, %v2545_v60 }
 0x16b   :  { %973 = vst [vmem:[%s2700_s3 + $0x50] sm:$0xff] %v1228_v5  ;;  %990 = vst.msk [vmem:[%s2700_s3 + $0xd8] sm:$0xff] %vm963_vm1, %v954_v41  ;;  %v957_v36 = vpop.f32.mrb[42].mxu1 }
 0x16c   :  { %974 = vst.msk [vmem:[%s2700_s3 + $0x58] sm:$0xff] %vm963_vm1, %v1229_v16  ;;  %v909_v9 = vpop.f32.mrb[12].mxu0  ;;  %v958_v49 = vadd.f32 %v957_v36, %v2565_v63  ;;  %v959_v40 = vpop.f32.mrb[43].mxu1 }
 0x16d   :  { %v1230_v60 = vadd.f32 %v909_v9, %v2547_v10  ;;  %v911_v11 = vpop.f32.mrb[13].mxu0  ;;  %v960_v38 = vadd.f32 %v959_v40, %v2567_v20 }
 0x16e   :  { %991 = vst [vmem:[%s2700_s3 + $0xe0] sm:$0xff] %v958_v49  ;;  %v1231_v48 = vadd.f32 %v911_v11, %v2549_v55 }
 0x16f   :  { %975 = vst [vmem:[%s2700_s3 + $0x60] sm:$0xff] %v1230_v60  ;;  %992 = vst.msk [vmem:[%s2700_s3 + $0xe8] sm:$0xff] %vm963_vm1, %v960_v38 }
 0x170   :  { %976 = vst.msk [vmem:[%s2700_s3 + $0x68] sm:$0xff] %vm963_vm1, %v1231_v48  ;;  %v915_v10 = vpop.f32.mrb[14].mxu0 }
 0x171   :  { %v1232_v30 = vadd.f32 %v915_v10, %v2551_v22  ;;  %v917_v63 = vpop.f32.mrb[15].mxu0 }
 0x172   :  { %v1233_v55 = vadd.f32 %v917_v63, %v2553_v34 }
 0x173   :  { %977 = vst [vmem:[%s2700_s3 + $0x70] sm:$0xff] %v1232_v30 }
 0x174   :  { %978 = vst.msk [vmem:[%s2700_s3 + $0x78] sm:$0xff] %vm963_vm1, %v1233_v55 }

</bundles_post_ra>
